<compile_context>
chip_gen: v5e
topology: v5e:2x2
jax: 0.10.0
libtpu: 0.0.40
codegen_flags: <defaults>
</compile_context>

<pallas_src>
import functools
import math
from typing import NamedTuple

import jax
import jax.numpy as jnp
from jax.experimental import pallas as pl
from jax.experimental.pallas import tpu as pltpu

LANE = 128  # lane width: last-dim padding target


def _round_up(n, m):
    return ((n + m - 1) // m) * m


def _cdiv(a, b):
    return -(-a // b)


class MIRNNDims(NamedTuple):
    embed: int       # E
    hidden: int      # H
    output: int      # O
    e_pad: int       # K rows of the x block (>= E+1, lane aligned)
    h_in_pad: int    # K rows of the h block (>= H+1, lane aligned)
    h_gate_pad: int  # N cols of the gate region (>= H, lane aligned)
    o_pad: int       # N cols of the output region (>= O, lane aligned)


# ---------------------------------------------------------------------------
# One-time parameter packing (call once; reuse across timesteps).
# ---------------------------------------------------------------------------
def prepare_params(params, *, compute_dtype=jnp.bfloat16):
    """Fuse/transpose/pad/bias-fold the cell parameters once.

    Packed weight layout (K = e_pad + h_in_pad rows, N = h_gate_pad + o_pad):
        rows [0:E]               : [ W_ih^T | W_h2o[:, :E]^T ]
        row  E       (x "1" col) : [ b_ih   | b_h2o          ]
        rows [e_pad:e_pad+H]     : [ W_hh^T | W_h2o[:, E:]^T ]
        row  e_pad+H (h "1" col) : [ b_hh   | 0              ]
    """
    w_ih = jnp.asarray(params["weight_ih"], jnp.float32)
    w_hh = jnp.asarray(params["weight_hh"], jnp.float32)
    b_ih = jnp.asarray(params["bias_ih"], jnp.float32)
    b_hh = jnp.asarray(params["bias_hh"], jnp.float32)
    w_h2o = jnp.asarray(params["h2o_weight"], jnp.float32)
    b_h2o = jnp.asarray(params["h2o_bias"], jnp.float32)

    H, E = w_ih.shape
    O = w_h2o.shape[0]
    dims = MIRNNDims(
        embed=E, hidden=H, output=O,
        e_pad=_round_up(E + 1, LANE),
        h_in_pad=_round_up(H + 1, LANE),
        h_gate_pad=_round_up(H, LANE),
        o_pad=_round_up(O, LANE),
    )
    k_pad = dims.e_pad + dims.h_in_pad
    n_pad = dims.h_gate_pad + dims.o_pad
    oc = dims.h_gate_pad  # start of the output-column region

    w = jnp.zeros((k_pad, n_pad), jnp.float32)
    # x block + x-side bias row (driven by the constant-1 column at index E).
    w = w.at[:E, :H].set(w_ih.T)
    w = w.at[:E, oc:oc + O].set(w_h2o[:, :E].T)
    w = w.at[E, :H].set(b_ih)
    w = w.at[E, oc:oc + O].set(b_h2o)
    # h block + h-side bias row (constant-1 column at index e_pad + H).
    hr = dims.e_pad
    w = w.at[hr:hr + H, :H].set(w_hh.T)
    w = w.at[hr:hr + H, oc:oc + O].set(w_h2o[:, E:].T)
    w = w.at[hr + H, :H].set(b_hh)

    return w.astype(compute_dtype), dims


# ---------------------------------------------------------------------------
# Kernel
# ---------------------------------------------------------------------------
def _mirnn_kernel(a_ref, w_ref, out_ref, hy_ref, *, e_pad, h_gate_pad):
    a = a_ref[...]
    w = w_ref[...]
    # Two MXU dots from one activation / one weight stream, split at a
    # 128-aligned K boundary. Biases already ride in the weight rows.
    xw = jnp.dot(a[:, :e_pad], w[:e_pad, :], preferred_element_type=jnp.float32)
    hw = jnp.dot(a[:, e_pad:], w[e_pad:, :], preferred_element_type=jnp.float32)
    # hidden = (x W_ih^T + b_ih) * (h W_hh^T + b_hh); hy = tanh(hidden)
    hy_ref[...] = jnp.tanh(xw[:, :h_gate_pad] * hw[:, :h_gate_pad]).astype(hy_ref.dtype)
    # out = x W_o_x^T + h W_o_h^T + b_o   ( == h2o(cat([x, h], 1)) )
    out_ref[...] = (xw[:, h_gate_pad:] + hw[:, h_gate_pad:]).astype(out_ref.dtype)


# ---------------------------------------------------------------------------
# Helpers: hardware-aware tiling + single-buffer probe
# ---------------------------------------------------------------------------
def _vmem_capacity_bytes():
    try:
        cap = getattr(pltpu.get_tpu_info(), "vmem_capacity_bytes", None)
        if cap:
            return int(cap)
    except Exception:
        pass
    return 64 << 20  # conservative: v7x per-TensorCore VMEM


@functools.lru_cache(maxsize=None)
def _single_buffer_supported():
    """Probe once whether pl.Buffered(1) (single-buffered constant blocks) lowers."""
    if not hasattr(pl, "Buffered"):
        return False
    try:
        with jax.ensure_compile_time_eval():
            def _copy(x_ref, o_ref):
                o_ref[...] = x_ref[...]
            x = jnp.zeros((8, LANE), jnp.float32)
            out = pl.pallas_call(
                _copy,
                out_shape=jax.ShapeDtypeStruct((8, LANE), jnp.float32),
                grid=(1,),
                in_specs=[pl.BlockSpec((8, LANE), lambda i: (0, 0),
                                       pipeline_mode=pl.Buffered(1))],
                out_specs=pl.BlockSpec((8, LANE), lambda i: (0, 0)),
            )(x)
            jax.block_until_ready(out)
        return True
    except Exception:
        return False


def _batch_tiling(B, k_pad, n_pad, h_gate_pad, o_pad, act_bytes):
    """Pick (b_tile, n_tiles, vmem_budget) from a per-generation VMEM budget."""
    row_align = 16 if act_bytes < 4 else 8          # sublane packing of act dtype
    budget = (_vmem_capacity_bytes() * 3) // 4      # 48 MiB v7x, 96 MiB v5e/v6e
    w_bytes = 2 * k_pad * n_pad * act_bytes         # weights (assume 2 buffers)
    avail = max(budget - w_bytes - (4 << 20), 4 << 20)
    # Per-row resident bytes: activation (x2 buf) + two f32 outputs (x2 buf)
    # + f32 matmul intermediates.
    row_bytes = 2 * k_pad * act_bytes + 2 * (h_gate_pad + o_pad) * 4 + 2 * n_pad * 4
    b_cap = max(avail // row_bytes, row_align)
    b_cap = min((b_cap // row_align) * row_align, 2048)
    # Balanced tiles (avoid up-to-2x padding on the last tile); >= 2 tiles once
    # B >= 16 so a v7x megacore "parallel" batch axis actually has 2 shards.
    n_tiles = max(_cdiv(B, b_cap), 2 if B >= 16 else 1)
    b_tile = _round_up(_cdiv(B, n_tiles), row_align)
    return b_tile, n_tiles, int(budget)


# ---------------------------------------------------------------------------
# Per-step forward
# ---------------------------------------------------------------------------
def mirnn_cell_forward(x, h, w_packed, *, dims):
    """One MIRNN step. x: (B, E), h: (B, H). Returns (out (B, O), hy (B, H)).

    `w_packed, dims = prepare_params(params)` must be computed once up front.
    """
    B = x.shape[0]
    E, H, O = dims.embed, dims.hidden, dims.output
    k_pad = dims.e_pad + dims.h_in_pad
    n_pad = dims.h_gate_pad + dims.o_pad
    cdt = w_packed.dtype
    act_bytes = jnp.dtype(cdt).itemsize

    b_tile, n_tiles, vmem_budget = _batch_tiling(
        B, k_pad, n_pad, dims.h_gate_pad, dims.o_pad, act_bytes)
    b_pad = b_tile * n_tiles

    # Packed lane-dense activation [x | 1 | 0.. | h | 1 | 0..] (single stream;
    # the constant-1 columns apply the biases stored in the packed weight rows).
    a = jnp.zeros((b_pad, k_pad), cdt)
    a = a.at[:B, :E].set(x.astype(cdt))
    a = a.at[:B, E].set(jnp.ones((B,), cdt))
    a = a.at[:B, dims.e_pad:dims.e_pad + H].set(h.astype(cdt))
    a = a.at[:B, dims.e_pad + H].set(jnp.ones((B,), cdt))

    w_spec_kwargs = {}
    if _single_buffer_supported():
        # Constant-index weight block: single-buffer it to halve weight VMEM.
        w_spec_kwargs["pipeline_mode"] = pl.Buffered(1)

    out_p, hy_p = pl.pallas_call(
        functools.partial(_mirnn_kernel, e_pad=dims.e_pad,
                          h_gate_pad=dims.h_gate_pad),
        out_shape=(jax.ShapeDtypeStruct((b_pad, dims.o_pad), jnp.float32),
                   jax.ShapeDtypeStruct((b_pad, dims.h_gate_pad), jnp.float32)),
        grid=(n_tiles,),
        in_specs=[
            pl.BlockSpec((b_tile, k_pad), lambda i: (i, 0)),
            pl.BlockSpec((k_pad, n_pad), lambda i: (0, 0), **w_spec_kwargs),
        ],
        out_specs=(pl.BlockSpec((b_tile, dims.o_pad), lambda i: (i, 0)),
                   pl.BlockSpec((b_tile, dims.h_gate_pad), lambda i: (i, 0))),
        compiler_params=pltpu.CompilerParams(
            dimension_semantics=("parallel",),
            vmem_limit_bytes=vmem_budget),
    )(a, w_packed)

    # Skip the slice copies when the padded shapes already match.
    out = out_p if (b_pad == B and dims.o_pad == O) else out_p[:B, :O]
    hy = hy_p if (b_pad == B and dims.h_gate_pad == H) else hy_p[:B, :H]
    return out, hy


# ---------------------------------------------------------------------------
# Reference / init (match the PyTorch module)
# ---------------------------------------------------------------------------
def init_params(key, embed_size, hidden_size, output_size):
    """U(-stdv, stdv) with stdv = 1/sqrt(hidden), matching reset_parameters."""
    input_size = embed_size + hidden_size
    stdv = 1.0 / math.sqrt(hidden_size)
    ks = jax.random.split(key, 6)
    u = lambda k, shape: jax.random.uniform(k, shape, jnp.float32, -stdv, stdv)
    return {
        "weight_ih": u(ks[0], (hidden_size, embed_size)),
        "weight_hh": u(ks[1], (hidden_size, hidden_size)),
        "bias_ih": u(ks[2], (hidden_size,)),
        "bias_hh": u(ks[3], (hidden_size,)),
        "h2o_weight": u(ks[4], (output_size, input_size)),
        "h2o_bias": u(ks[5], (output_size,)),
    }


def reference_forward(x, h, params):
    """Pure-JAX f32 reference matching the PyTorch forward exactly."""
    input_ = jnp.concatenate([x, h], axis=1)
    hidden = (x @ params["weight_ih"].T + params["bias_ih"]) * \
             (h @ params["weight_hh"].T + params["bias_hh"])
    hy = jnp.tanh(hidden)
    output = input_ @ params["h2o_weight"].T + params["h2o_bias"]
    return output, hy


if __name__ == "__main__":
    batch = 2
    embed_size = 16
    hidden_size = 32
    output_size = 8

    key = jax.random.PRNGKey(0)
    k_params, k_x, k_h = jax.random.split(key, 3)

    params = init_params(k_params, embed_size, hidden_size, output_size)
    x = jax.random.normal(k_x, (batch, embed_size), jnp.float32)
    h = jax.random.normal(k_h, (batch, hidden_size), jnp.float32)

    # One-time packing (hoisted out of the per-step path), then a jitted step.
    w_packed, dims = prepare_params(params)
    step = jax.jit(mirnn_cell_forward, static_argnames=("dims",))

    out, hy = step(x, h, w_packed, dims=dims)
    jax.block_until_ready((out, hy))

    ref_out, ref_hy = reference_forward(x, h, params)
    assert out.shape == (batch, output_size) and hy.shape == (batch, hidden_size)
    # bf16 weights/activations (f32 accumulation) -> relaxed tolerance vs the
    # exact f32 reference.
    assert jnp.allclose(out, ref_out, atol=5e-2, rtol=5e-2), \
        f"out mismatch: {jnp.max(jnp.abs(out - ref_out))}"
    assert jnp.allclose(hy, ref_hy, atol=5e-2, rtol=5e-2), \
        f"hy mismatch: {jnp.max(jnp.abs(hy - ref_hy))}"

    print("KERNEL_OK")
</pallas_src>

<mosaic_0001>
module attributes {stable_mosaic.version = 11 : i64} {
  func.func @_mirnn_kernel(%arg0: i32, %arg1: memref<16x256xbf16, #tpu.memory_space<vmem>>, %arg2: memref<256x256xbf16, #tpu.memory_space<vmem>>, %arg3: memref<16x128xf32, #tpu.memory_space<vmem>>, %arg4: memref<16x128xf32, #tpu.memory_space<vmem>>) attributes {dimension_semantics = [#tpu.dimension_semantics<parallel>], iteration_bounds = array<i64: 1>, scalar_prefetch = 0 : i64, scratch_operands = 0 : i64, tpu.core_type = #tpu.core_type<tc>, window_params = [{transform_indices = @transform_0, window_bounds = array<i64: 16, 256>}, {pipeline_mode = #tpu.pipeline_mode<synchronous>, transform_indices = @transform_1, window_bounds = array<i64: 256, 256>}, {transform_indices = @transform_2, window_bounds = array<i64: 16, 128>}, {transform_indices = @transform_3, window_bounds = array<i64: 16, 128>}]} {
    %c0 = arith.constant 0 : index
    %c0_0 = arith.constant 0 : index
    %0 = vector.load %arg1[%c0, %c0_0] : memref<16x256xbf16, #tpu.memory_space<vmem>>, vector<16x256xbf16>
    %c0_1 = arith.constant 0 : index
    %c0_2 = arith.constant 0 : index
    %1 = vector.load %arg2[%c0_1, %c0_2] : memref<256x256xbf16, #tpu.memory_space<vmem>>, vector<256x256xbf16>
    %2 = vector.extract_strided_slice %0 {offsets = [0, 0], sizes = [16, 128], strides = [1, 1]} : vector<16x256xbf16> to vector<16x128xbf16>
    %3 = vector.extract_strided_slice %1 {offsets = [0, 0], sizes = [128, 256], strides = [1, 1]} : vector<256x256xbf16> to vector<128x256xbf16>
    %cst = arith.constant dense<0.000000e+00> : vector<16x256xf32>
    %4 = tpu.matmul %2, %3, %cst {dimension_numbers = #tpu.dot_dimension_numbers<[1], [0], [0], [1], [0, 0, 1, 1], [], []>} : vector<16x128xbf16>, vector<128x256xbf16>, vector<16x256xf32> -> vector<16x256xf32>
    %5 = vector.extract_strided_slice %0 {offsets = [0, 128], sizes = [16, 128], strides = [1, 1]} : vector<16x256xbf16> to vector<16x128xbf16>
    %6 = vector.extract_strided_slice %1 {offsets = [128, 0], sizes = [128, 256], strides = [1, 1]} : vector<256x256xbf16> to vector<128x256xbf16>
    %cst_3 = arith.constant dense<0.000000e+00> : vector<16x256xf32>
    %7 = tpu.matmul %5, %6, %cst_3 {dimension_numbers = #tpu.dot_dimension_numbers<[1], [0], [0], [1], [0, 0, 1, 1], [], []>} : vector<16x128xbf16>, vector<128x256xbf16>, vector<16x256xf32> -> vector<16x256xf32>
    %8 = vector.extract_strided_slice %4 {offsets = [0, 0], sizes = [16, 128], strides = [1, 1]} : vector<16x256xf32> to vector<16x128xf32>
    %9 = vector.extract_strided_slice %7 {offsets = [0, 0], sizes = [16, 128], strides = [1, 1]} : vector<16x256xf32> to vector<16x128xf32>
    %10 = arith.mulf %8, %9 : vector<16x128xf32>
    %11 = math.tanh %10 : vector<16x128xf32>
    %c0_4 = arith.constant 0 : index
    %c0_5 = arith.constant 0 : index
    %12 = vector.load %arg4[%c0_4, %c0_5] : memref<16x128xf32, #tpu.memory_space<vmem>>, vector<16x128xf32>
    tpu.vector_store %arg4[%c0_4, %c0_5], %11 {strides = array<i32>} : memref<16x128xf32, #tpu.memory_space<vmem>>, vector<16x128xf32>,
    %13 = vector.extract_strided_slice %4 {offsets = [0, 128], sizes = [16, 128], strides = [1, 1]} : vector<16x256xf32> to vector<16x128xf32>
    %14 = vector.extract_strided_slice %7 {offsets = [0, 128], sizes = [16, 128], strides = [1, 1]} : vector<16x256xf32> to vector<16x128xf32>
    %15 = arith.addf %13, %14 : vector<16x128xf32>
    %c0_6 = arith.constant 0 : index
    %c0_7 = arith.constant 0 : index
    %16 = vector.load %arg3[%c0_6, %c0_7] : memref<16x128xf32, #tpu.memory_space<vmem>>, vector<16x128xf32>
    tpu.vector_store %arg3[%c0_6, %c0_7], %15 {strides = array<i32>} : memref<16x128xf32, #tpu.memory_space<vmem>>, vector<16x128xf32>,
    return
  }
  func.func @transform_0(%arg0: i32) -> (i32, i32) {
    %c0_i32 = arith.constant 0 : i32
    %c0_i32_0 = arith.constant 0 : i32
    return %arg0, %c0_i32 : i32, i32
  }
  func.func @transform_1(%arg0: i32) -> (i32, i32) {
    %c0_i32 = arith.constant 0 : i32
    %c0_i32_0 = arith.constant 0 : i32
    %c0_i32_1 = arith.constant 0 : i32
    return %c0_i32, %c0_i32_0 : i32, i32
  }
  func.func @transform_2(%arg0: i32) -> (i32, i32) {
    %c0_i32 = arith.constant 0 : i32
    %c0_i32_0 = arith.constant 0 : i32
    return %arg0, %c0_i32 : i32, i32
  }
  func.func @transform_3(%arg0: i32) -> (i32, i32) {
    %c0_i32 = arith.constant 0 : i32
    %c0_i32_0 = arith.constant 0 : i32
    return %arg0, %c0_i32 : i32, i32
  }
}

</mosaic_0001>

<bundles_post_ra>
// kernel: mirnn_cell_forward.1
= control target key start
LH: loop header
LB: loop body
LE: loop exit
PB: predicated region body
PF: predicated region fallthrough
CT: control target
= control target key end

     0   :  { %9 = vsyncpa [#allocation3], 0  ;;  %s511_s15 = smov [#allocation2]   ;;  %s512_s17 = smov 128   ;;  %s561_s0 = inlined_call_operand.vmem [shape: bf16[16,256], index: 0, kind: input, shape index: {}]   ;;  %s562_s1 = inlined_call_operand.hbm [shape: bf16[256,256], index: 1, kind: input, shape index: {}]   ;;  %s563_s2 = inlined_call_operand.vmem [shape: f32[16,128], index: 2, kind: output, shape index: {0}]   ;;  %s564_s3 = inlined_call_operand.vmem [shape: f32[16,128], index: 3, kind: output, shape index: {1}]  }
   0x1   :  { %s16_s14 = sshll.u32 %s562_s1, 4  ;;  %s18_s16 = sshll.u32 %s511_s15, 4  ;;  %s17_s14 = int_to_ptr.hbm [resolvable:$true] %s16_s14  ;;  %s19_s16 = int_to_ptr.vmem [resolvable:$true] %s18_s16 }
   0x2   :  { %s513_s18 = smov 8  }
   0x3   :  { %24 = dma.hbm_to_vmem [thread:$0]  %s17_s14, 4096, %s19_s16, [#allocation3], %s512_s17, %s512_s17, %s513_s18  }
   0x4   :  { %509 = dma.done.wait [#allocation3], 4096  }
   0x5   :  { %510 = vsyncadd [#allocation3], 4294963200  ;;  %v370_v0 = vld [vmem:[#allocation2 + $0x70] sm:$0xf]  ;;  %v461_v1 = vld [vmem:[#allocation2 + $0x74] sm:$0xf0] }
   0x6   :  { %v438_v2 = vld [vmem:[#allocation2 + $0xf0] sm:$0xf]  ;;  %v371_v3 = vor.u32 %v461_v1, %v370_v0  ;;  %v477_v4 = vld [vmem:[#allocation2 + $0xf4] sm:$0xf0]  ;;  %v476_v5 = vld [vmem:[#allocation2 + $0xf4] sm:$0xf] }
   0x7   :  { %v440_v6 = vld [vmem:[#allocation2 + $0xf8] sm:$0xf0]  ;;  %v439_v7 = vor.u32 %v477_v4, %v438_v2  ;;  %v362_v9 = vld [vmem:[#allocation2 + $0x60] sm:$0xf]  ;;  %v459_v10 = vld [vmem:[#allocation2 + $0x64] sm:$0xf0] }
   0x8   :  { %v443_v8 = vor.u32 %v476_v5, %v440_v6  ;;  %v430_v11 = vld [vmem:[#allocation2 + $0xe0] sm:$0xf]  ;;  %149 = vmatpush.bf16.msra.mxu0 %v371_v3  ;;  %v363_v12 = vor.u32 %v459_v10, %v362_v9  ;;  %v475_v13 = vld [vmem:[#allocation2 + $0xe4] sm:$0xf0]  ;;  %v474_v14 = vld [vmem:[#allocation2 + $0xe4] sm:$0xf] }
   0x9   :  { %v432_v15 = vld [vmem:[#allocation2 + $0xe8] sm:$0xf0]  ;;  %261 = vmatpush.bf16.msra.mxu2 %v439_v7  ;;  %v431_v16 = vor.u32 %v475_v13, %v430_v11  ;;  %v460_v18 = vld [vmem:[#allocation2 + $0x74] sm:$0xf]  ;;  %v372_v19 = vld [vmem:[#allocation2 + $0x78] sm:$0xf0] }
   0xa   :  { %275 = vmatpush.bf16.msra.mxu3 %v443_v8  ;;  %v435_v17 = vor.u32 %v474_v14, %v432_v15  ;;  %v354_v20 = vld [vmem:[#allocation2 + $0x50] sm:$0xf]  ;;  %v375_v21 = vor.u32 %v460_v18, %v372_v19  ;;  %v457_v22 = vld [vmem:[#allocation2 + $0x54] sm:$0xf0]  ;;  %v472_v25 = vld [vmem:[#allocation2 + $0xd4] sm:$0xf] }
   0xb   :  { %v422_v23 = vld [vmem:[#allocation2 + $0xd0] sm:$0xf]  ;;  %v473_v24 = vld [vmem:[#allocation2 + $0xd4] sm:$0xf0]  ;;  %v424_v26 = vld [vmem:[#allocation2 + $0xd8] sm:$0xf0]  ;;  %v355_v28 = vor.u32 %v457_v22, %v354_v20 }
   0xc   :  { %v458_v27 = vld [vmem:[#allocation2 + $0x64] sm:$0xf]  ;;  %150 = vmatpush.bf16.msra.mxu0 %v363_v12  ;;  %163 = vmatpush.bf16.msra.mxu1 %v375_v21  ;;  %v364_v29 = vld [vmem:[#allocation2 + $0x68] sm:$0xf0]  ;;  %v346_v30 = vld [vmem:[#allocation2 + $0x40] sm:$0xf]  ;;  %v423_v32 = vor.u32 %v473_v24, %v422_v23  ;;  %v427_v33 = vor.u32 %v472_v25, %v424_v26 }
   0xd   :  { %v455_v31 = vld [vmem:[#allocation2 + $0x44] sm:$0xf0]  ;;  %262 = vmatpush.bf16.msra.mxu2 %v431_v16  ;;  %v367_v34 = vor.u32 %v458_v27, %v364_v29  ;;  %v414_v35 = vld [vmem:[#allocation2 + $0xc0] sm:$0xf]  ;;  %v470_v37 = vld [vmem:[#allocation2 + $0xc4] sm:$0xf] }
   0xe   :  { %276 = vmatpush.bf16.msra.mxu3 %v435_v17  ;;  %v471_v36 = vld [vmem:[#allocation2 + $0xc4] sm:$0xf0]  ;;  %v416_v38 = vld [vmem:[#allocation2 + $0xc8] sm:$0xf0]  ;;  %v456_v39 = vld [vmem:[#allocation2 + $0x54] sm:$0xf]  ;;  %v347_v41 = vor.u32 %v455_v31, %v346_v30 }
   0xf   :  { %v356_v40 = vld [vmem:[#allocation2 + $0x58] sm:$0xf0]  ;;  %v338_v43 = vld [vmem:[#allocation2 + $0x30] sm:$0xf]  ;;  %v453_v44 = vld [vmem:[#allocation2 + $0x34] sm:$0xf0]  ;;  %v415_v45 = vor.u32 %v471_v36, %v414_v35  ;;  %v419_v46 = vor.u32 %v470_v37, %v416_v38 }
  0x10   :  { %151 = vmatpush.bf16.msra.mxu0 %v355_v28  ;;  %164 = vmatpush.bf16.msra.mxu1 %v367_v34  ;;  %v359_v42 = vor.u32 %v456_v39, %v356_v40  ;;  %v406_v47 = vld [vmem:[#allocation2 + $0xb0] sm:$0xf]  ;;  %v454_v48 = vld [vmem:[#allocation2 + $0x44] sm:$0xf]  ;;  %v348_v49 = vld [vmem:[#allocation2 + $0x48] sm:$0xf0]  ;;  %v339_v53 = vor.u32 %v453_v44, %v338_v43 }
  0x11   :  { %263 = vmatpush.bf16.msra.mxu2 %v423_v32  ;;  %v469_v50 = vld [vmem:[#allocation2 + $0xb4] sm:$0xf0]  ;;  %v468_v51 = vld [vmem:[#allocation2 + $0xb4] sm:$0xf]  ;;  %v408_v52 = vld [vmem:[#allocation2 + $0xb8] sm:$0xf0]  ;;  %v351_v54 = vor.u32 %v454_v48, %v348_v49 }
  0x12   :  { %277 = vmatpush.bf16.msra.mxu3 %v427_v33  ;;  %v330_v55 = vld [vmem:[#allocation2 + $0x20] sm:$0xf]  ;;  %v451_v56 = vld [vmem:[#allocation2 + $0x24] sm:$0xf0]  ;;  %v407_v57 = vor.u32 %v469_v50, %v406_v47  ;;  %v411_v58 = vor.u32 %v468_v51, %v408_v52  ;;  %v452_v60 = vld [vmem:[#allocation2 + $0x34] sm:$0xf] }
  0x13   :  { %v398_v59 = vld [vmem:[#allocation2 + $0xa0] sm:$0xf]  ;;  %v340_v61 = vld [vmem:[#allocation2 + $0x38] sm:$0xf0]  ;;  %v467_v62 = vld [vmem:[#allocation2 + $0xa4] sm:$0xf0]  ;;  %v331_v1 = vor.u32 %v451_v56, %v330_v55 }
  0x14   :  { %152 = vmatpush.bf16.msra.mxu0 %v347_v41  ;;  %165 = vmatpush.bf16.msra.mxu1 %v359_v42  ;;  %v466_v63 = vld [vmem:[#allocation2 + $0xa4] sm:$0xf]  ;;  %v400_v0 = vld [vmem:[#allocation2 + $0xa8] sm:$0xf0]  ;;  %v343_v2 = vor.u32 %v452_v60, %v340_v61  ;;  %v322_v3 = vld [vmem:[#allocation2 + $0x10] sm:$0xf]  ;;  %v399_v5 = vor.u32 %v467_v62, %v398_v59 }
  0x15   :  { %264 = vmatpush.bf16.msra.mxu2 %v415_v45  ;;  %v449_v4 = vld [vmem:[#allocation2 + $0x14] sm:$0xf0]  ;;  %v403_v6 = vor.u32 %v466_v63, %v400_v0  ;;  %v390_v7 = vld [vmem:[#allocation2 + $0x90] sm:$0xf]  ;;  %v450_v8 = vld [vmem:[#allocation2 + $0x24] sm:$0xf] }
  0x16   :  { %278 = vmatpush.bf16.msra.mxu3 %v419_v46  ;;  %v332_v9 = vld [vmem:[#allocation2 + $0x28] sm:$0xf0]  ;;  %v465_v10 = vld [vmem:[#allocation2 + $0x94] sm:$0xf0]  ;;  %v464_v11 = vld [vmem:[#allocation2 + $0x94] sm:$0xf]  ;;  %v323_v13 = vor.u32 %v449_v4, %v322_v3 }
  0x17   :  { %v392_v12 = vld [vmem:[#allocation2 + $0x98] sm:$0xf0]  ;;  %v335_v14 = vor.u32 %v450_v8, %v332_v9  ;;  %v314_v15 = vld [vmem:[#allocation2] sm:$0xf]  ;;  %v447_v16 = vld [vmem:[#allocation2 + $0x4] sm:$0xf0]  ;;  %v391_v17 = vor.u32 %v465_v10, %v390_v7 }
  0x18   :  { %153 = vmatpush.bf16.msra.mxu0 %v339_v53  ;;  %166 = vmatpush.bf16.msra.mxu1 %v351_v54  ;;  %v395_v18 = vor.u32 %v464_v11, %v392_v12  ;;  %v382_v19 = vld [vmem:[#allocation2 + $0x80] sm:$0xf]  ;;  %v448_v20 = vld [vmem:[#allocation2 + $0x14] sm:$0xf]  ;;  %v324_v21 = vld [vmem:[#allocation2 + $0x18] sm:$0xf0]  ;;  %v315_v25 = vor.u32 %v447_v16, %v314_v15 }
  0x19   :  { %265 = vmatpush.bf16.msra.mxu2 %v407_v57  ;;  %v463_v22 = vld [vmem:[#allocation2 + $0x84] sm:$0xf0]  ;;  %v462_v23 = vld [vmem:[#allocation2 + $0x84] sm:$0xf]  ;;  %v384_v24 = vld [vmem:[#allocation2 + $0x88] sm:$0xf0]  ;;  %v327_v26 = vor.u32 %v448_v20, %v324_v21 }
  0x1a   :  { %279 = vmatpush.bf16.msra.mxu3 %v411_v58  ;;  %v310_v27 = vld [vmem:[%s561_s0] sm:$0xf]  ;;  %v445_v28 = vld [vmem:[%s561_s0 + $0x4] sm:$0xf0]  ;;  %v383_v29 = vor.u32 %v463_v22, %v382_v19  ;;  %v387_v30 = vor.u32 %v462_v23, %v384_v24  ;;  %v444_v31 = vld [vmem:[%s561_s0 + $0x4] sm:$0xf] }
  0x1b   :  { %v376_v32 = vld [vmem:[%s561_s0 + $0x8] sm:$0xf0]  ;;  %v446_v33 = vld [vmem:[#allocation2 + $0x4] sm:$0xf]  ;;  %v311_v35 = vor.u32 %v445_v28, %v310_v27 }
  0x1c   :  { %154 = vmatpush.bf16.msra.mxu0 %v331_v1  ;;  %167 = vmatpush.bf16.msra.mxu1 %v343_v2  ;;  %v316_v34 = vld [vmem:[#allocation2 + $0x8] sm:$0xf0]  ;;  %v379_v36 = vor.u32 %v444_v31, %v376_v32 }
  0x1d   :  { %266 = vmatpush.bf16.msra.mxu2 %v399_v5  ;;  %v319_v37 = vor.u32 %v446_v33, %v316_v34 }
  0x1e   :  { %280 = vmatpush.bf16.msra.mxu3 %v403_v6 }
  0x20   :  { %155 = vmatpush.bf16.msra.mxu0 %v323_v13  ;;  %168 = vmatpush.bf16.msra.mxu1 %v335_v14 }
  0x21   :  { %267 = vmatpush.bf16.msra.mxu2 %v391_v17 }
  0x22   :  { %281 = vmatpush.bf16.msra.mxu3 %v395_v18 }
  0x24   :  { %156 = vmatpush.bf16.msra.mxu0 %v315_v25  ;;  %169 = vmatpush.bf16.msra.mxu1 %v327_v26 }
  0x25   :  { %268 = vmatpush.bf16.msra.mxu2 %v383_v29 }
  0x26   :  { %282 = vmatpush.bf16.msra.mxu3 %v387_v30 }
  0x27   :  { %157 = vmatmul.bf16.vlgmr.msra.gmra.mxu0 %v311_v35 }
  0x28   :  { %269 = vmatmul.bf16.vlgmr.msra.gmra.mxu2 %v379_v36  ;;  %170 = vmatpush.bf16.msra.mxu1 %v319_v37 }
  0x29   :  { %283 = vmatmul.bf16.vlgmr.msra.gmra.mxu3 %v379_v36 }
  0x2b   :  { %171 = vmatmul.bf16.vlgmr.msra.gmra.mxu1 %v311_v35 }
  0xa4   :  { %v158_v38 = vpop.f32.mrf.mxu0 }
  0xa8   :  { %v172_v39 = vpop.f32.mrf.mxu1 }
  0xab   :  { %v270_v40 = vpop.f32.mrf.mxu2 }
  0xac   :  { %v284_v41 = vpop.f32.mrf.mxu3  ;;  %v289_v42 = vmul.f32 %v270_v40, %v158_v38  ;;  %v160_v45 = vpop.f32.mrf.mxu0 }
  0xad   :  { %v295_v43 = vadd.f32 %v284_v41, %v172_v39 }
  0xae   :  { %481 = vtanh.f32 %v289_v42 }
  0xaf   :  { %297 = vst [vmem:[%s563_s2] sm:$0xff] %v295_v43 }
  0xb0   :  { %v174_v44 = vpop.f32.mrf.mxu1 }
  0xb3   :  { %v272_v46 = vpop.f32.mrf.mxu2 }
  0xb4   :  { %v286_v47 = vpop.f32.mrf.mxu3  ;;  %v482_v48 = vpop.eup %481  ;;  %v290_v49 = vmul.f32 %v272_v46, %v160_v45 }
  0xb5   :  { %v296_v50 = vadd.f32 %v286_v47, %v174_v44  ;;  %293 = vst [vmem:[%s564_s3] sm:$0xff] %v482_v48 }
  0xb6   :  { %483 = vtanh.f32 %v290_v49 }
  0xb7   :  { %298 = vst [vmem:[%s563_s2 + $0x8] sm:$0xff] %v296_v50 }
  0xbc   :  { %v484_v51 = vpop.eup %483 }
  0xbd   :  { %294 = vst [vmem:[%s564_s3 + $0x8] sm:$0xff] %v484_v51 }
  0xbe   :  { %307 = vsyncpa [#allocation3], 1 }

</bundles_post_ra>
